<compile_context>
chip_gen: v5e
topology: v5e:2x2
jax: 0.10.0
libtpu: 0.0.40
codegen_flags: <defaults>
</compile_context>

<pallas_src>
import functools

import jax
import jax.numpy as jnp
from jax.experimental import pallas as pl
from jax.experimental.pallas import tpu as pltpu  # noqa: F401  (kept for TPU backend)


# ----------------------------------------------------------------------------
# Module config (fixed concrete instantiation)
# ----------------------------------------------------------------------------
LAYER_SIZES = [4, 32, 8]
ADD_BIAS = [False, True]
APPLY_BN = [True, False]
ACTIVATIONS = ['relu', '']          # per-layer, keys of _MLPBase.ACTIVATIONS
BN_EPS = 1e-5


# ----------------------------------------------------------------------------
# Shared activation dispatcher (trace-time branch; identical math in kernel and
# in the pure-JAX reference).  `channel_axis` only matters for softmax.
# ----------------------------------------------------------------------------
def _apply_activation(y, name, channel_axis):
    if name == 'relu':
        return jnp.maximum(y, 0.0)
    if name == 'lrelu':
        return jnp.where(y >= 0.0, y, 0.01 * y)      # nn.LeakyReLU default slope
    if name == 'tanh':
        return jnp.tanh(y)
    if name == 'sigmoid':
        return jax.nn.sigmoid(y)
    if name == 'softmax':
        # Channel axis is never tiled (whole arrays are one block) -> safe.
        return jax.nn.softmax(y, axis=channel_axis)
    return y                                          # '' / None -> identity


# ----------------------------------------------------------------------------
# Fused single-step kernel.
#   refs = (x_ref, w_aug_1, ..., w_aug_L, out_1, ..., out_L)
#   x_ref:   (B, C, HW)        whole input, channels on sublanes, pixels on lanes
#   w_aug_i: (C_out_i, C_in_i + 1)   BN/bias folded; last column is the shift
#   out_i:   (B, C_out_i, HW)
# The intermediate activation never leaves vregs/VMEM.
# ----------------------------------------------------------------------------
def _fused_mlp_kernel(*refs, batch, num_layers, activations):
    x_ref = refs[0]
    w_refs = refs[1:1 + num_layers]
    out_refs = refs[1 + num_layers:]

    hw = x_ref.shape[-1]
    ones_row = jnp.ones((1, hw), jnp.float32)         # hoisted, reused every layer

    for b in range(batch):                            # B=2: tiny static loop
        y = x_ref[b].astype(jnp.float32)              # (C, HW)
        for li in range(num_layers):
            y_aug = jnp.concatenate([y, ones_row], axis=0)          # (C_in+1, HW)
            y = jnp.dot(w_refs[li][...], y_aug,
                        preferred_element_type=jnp.float32)          # (C_out, HW)
            y = _apply_activation(y, activations[li], channel_axis=0)
            out_refs[li][b] = y.astype(out_refs[li].dtype)
            # y stays live as the next layer's input (no HBM round-trip).


# ----------------------------------------------------------------------------
# Parameter init (deterministic) with eval-mode BN + conv bias folded into one
# augmented weight per layer:
#   PyTorch eval:  (x*W + b) * scale + (beta - mean*scale)
#              =   [x; 1] @ [ (W*scale) | (b*scale + beta - mean*scale) ]^T
# ----------------------------------------------------------------------------
def init_params(key):
    params = []
    for li in range(len(LAYER_SIZES) - 1):
        cin, cout = LAYER_SIZES[li], LAYER_SIZES[li + 1]
        key, kw, kb, kg, kbe, km, kv = jax.random.split(key, 7)
        bound = 1.0 / jnp.sqrt(cin)                   # PyTorch conv init range
        # Conv2d(k=1) weight (cout, cin, 1, 1) stored squeezed as (cout, cin).
        w = jax.random.uniform(kw, (cout, cin), jnp.float32, -bound, bound)
        if ADD_BIAS[li]:
            b = jax.random.uniform(kb, (cout,), jnp.float32, -bound, bound)
        else:
            b = jnp.zeros((cout,), jnp.float32)
        if APPLY_BN[li]:
            gamma = 1.0 + 0.1 * jax.random.normal(kg, (cout,), jnp.float32)
            beta = 0.1 * jax.random.normal(kbe, (cout,), jnp.float32)
            running_mean = 0.1 * jax.random.normal(km, (cout,), jnp.float32)
            running_var = jnp.abs(1.0 + 0.1 * jax.random.normal(kv, (cout,), jnp.float32))
            scale = gamma * jax.lax.rsqrt(running_var + BN_EPS)
            w = w * scale[:, None]
            shift = b * scale + (beta - running_mean * scale)
        else:
            shift = b
        w_aug = jnp.concatenate([w, shift[:, None]], axis=1)   # (cout, cin+1)
        params.append(dict(w_aug=w_aug, activation=ACTIVATIONS[li]))
    return params


# ----------------------------------------------------------------------------
# Forward: exact analogue of _MLPBase.forward (eval mode).
# Returns the list of per-layer outputs, each in NCHW.
# ----------------------------------------------------------------------------
def mlp_forward(x_nchw, params):
    B, C, H, W = x_nchw.shape
    assert C == LAYER_SIZES[0]
    HW = H * W
    x3 = x_nchw.reshape(B, C, HW)                     # free NCHW view, no transpose

    num_layers = len(params)
    activations = tuple(p['activation'] for p in params)
    kernel = functools.partial(_fused_mlp_kernel, batch=B,
                               num_layers=num_layers, activations=activations)

    out_shapes = tuple(
        jax.ShapeDtypeStruct((B, p['w_aug'].shape[0], HW), jnp.float32)
        for p in params)
    operands = [x3] + [p['w_aug'] for p in params]

    # No grid / no BlockSpecs: single invocation, every array is one whole block
    # in VMEM (total footprint << 1 MiB on all of v5e / v6e / v7x).
    outs = pl.pallas_call(kernel, out_shape=out_shapes)(*operands)

    return [o.reshape(B, o.shape[1], H, W) for o in outs]


# ----------------------------------------------------------------------------
# Pure-JAX reference (same folded parameters) for correctness checking.
# ----------------------------------------------------------------------------
def mlp_forward_ref(x_nchw, params):
    B, C, H, W = x_nchw.shape
    y = x_nchw.reshape(B, C, H * W).astype(jnp.float32)
    outputs = []
    for p in params:
        w = p['w_aug'][:, :-1]
        shift = p['w_aug'][:, -1:]
        y = jnp.einsum('nc,bcs->bns', w, y) + shift[None]
        y = _apply_activation(y, p['activation'], channel_axis=1)
        outputs.append(y.reshape(B, y.shape[1], H, W))
    return outputs


if __name__ == "__main__":
    key = jax.random.PRNGKey(0)
    kx, kp = jax.random.split(key)

    B, C, H, W = 2, 4, 16, 16
    x = jax.random.normal(kx, (B, C, H, W), jnp.float32)
    params = init_params(kp)

    outs = mlp_forward(x, params)
    outs = [jax.block_until_ready(o) for o in outs]

    refs = mlp_forward_ref(x, params)
    for o, r in zip(outs, refs):
        assert o.shape == r.shape
        assert jnp.max(jnp.abs(o - r)) < 1e-4, "mismatch vs reference"

    # Expected shapes: [(2, 32, 16, 16), (2, 8, 16, 16)]
    assert outs[0].shape == (B, LAYER_SIZES[1], H, W)
    assert outs[1].shape == (B, LAYER_SIZES[2], H, W)

    print("KERNEL_OK")
</pallas_src>

<mosaic_0001>
module attributes {stable_mosaic.version = 11 : i64} {
  func.func @_fused_mlp_kernel(%arg0: memref<2x4x256xf32, #tpu.memory_space<vmem>>, %arg1: memref<32x5xf32, #tpu.memory_space<vmem>>, %arg2: memref<8x33xf32, #tpu.memory_space<vmem>>, %arg3: memref<2x32x256xf32, #tpu.memory_space<vmem>>, %arg4: memref<2x8x256xf32, #tpu.memory_space<vmem>>) attributes {dimension_semantics = [], scalar_prefetch = 0 : i64, scratch_operands = 0 : i64, tpu.core_type = #tpu.core_type<tc>} {
    %cst = arith.constant 1.000000e+00 : f32
    %0 = vector.broadcast %cst : f32 to vector<1x256xf32>
    %c0 = arith.constant 0 : index
    %c0_0 = arith.constant 0 : index
    %c0_1 = arith.constant 0 : index
    %1 = vector.load %arg0[%c0, %c0_0, %c0_1] : memref<2x4x256xf32, #tpu.memory_space<vmem>>, vector<1x4x256xf32>
    %2 = vector.shape_cast %1 : vector<1x4x256xf32> to vector<4x256xf32>
    %3 = tpu.concatenate %2, %0 in 0 : vector<4x256xf32>, vector<1x256xf32> -> vector<5x256xf32>
    %c0_2 = arith.constant 0 : index
    %c0_3 = arith.constant 0 : index
    %4 = vector.load %arg1[%c0_2, %c0_3] : memref<32x5xf32, #tpu.memory_space<vmem>>, vector<32x5xf32>
    %cst_4 = arith.constant dense<0.000000e+00> : vector<32x256xf32>
    %5 = tpu.matmul %4, %3, %cst_4 {dimension_numbers = #tpu.dot_dimension_numbers<[1], [0], [0], [1], [0, 0, 1, 1], [], []>} : vector<32x5xf32>, vector<5x256xf32>, vector<32x256xf32> -> vector<32x256xf32>
    %cst_5 = arith.constant 0.000000e+00 : f32
    %6 = vector.broadcast %cst_5 : f32 to vector<32x256xf32>
    %7 = arith.maximumf %5, %6 : vector<32x256xf32>
    %c0_6 = arith.constant 0 : index
    %c0_7 = arith.constant 0 : index
    %c0_8 = arith.constant 0 : index
    %8 = vector.load %arg3[%c0_6, %c0_7, %c0_8] : memref<2x32x256xf32, #tpu.memory_space<vmem>>, vector<1x32x256xf32>
    %9 = vector.shape_cast %8 : vector<1x32x256xf32> to vector<32x256xf32>
    %10 = vector.shape_cast %7 : vector<32x256xf32> to vector<1x32x256xf32>
    tpu.vector_store %arg3[%c0_6, %c0_7, %c0_8], %10 {strides = array<i32>} : memref<2x32x256xf32, #tpu.memory_space<vmem>>, vector<1x32x256xf32>,
    %11 = tpu.concatenate %7, %0 in 0 : vector<32x256xf32>, vector<1x256xf32> -> vector<33x256xf32>
    %c0_9 = arith.constant 0 : index
    %c0_10 = arith.constant 0 : index
    %12 = vector.load %arg2[%c0_9, %c0_10] : memref<8x33xf32, #tpu.memory_space<vmem>>, vector<8x33xf32>
    %cst_11 = arith.constant dense<0.000000e+00> : vector<8x256xf32>
    %13 = tpu.matmul %12, %11, %cst_11 {dimension_numbers = #tpu.dot_dimension_numbers<[1], [0], [0], [1], [0, 0, 1, 1], [], []>} : vector<8x33xf32>, vector<33x256xf32>, vector<8x256xf32> -> vector<8x256xf32>
    %c0_12 = arith.constant 0 : index
    %c0_13 = arith.constant 0 : index
    %c0_14 = arith.constant 0 : index
    %14 = vector.load %arg4[%c0_12, %c0_13, %c0_14] : memref<2x8x256xf32, #tpu.memory_space<vmem>>, vector<1x8x256xf32>
    %15 = vector.shape_cast %14 : vector<1x8x256xf32> to vector<8x256xf32>
    %16 = vector.shape_cast %13 : vector<8x256xf32> to vector<1x8x256xf32>
    tpu.vector_store %arg4[%c0_12, %c0_13, %c0_14], %16 {strides = array<i32>} : memref<2x8x256xf32, #tpu.memory_space<vmem>>, vector<1x8x256xf32>,
    %c1 = arith.constant 1 : index
    %c0_15 = arith.constant 0 : index
    %c0_16 = arith.constant 0 : index
    %17 = vector.load %arg0[%c1, %c0_15, %c0_16] : memref<2x4x256xf32, #tpu.memory_space<vmem>>, vector<1x4x256xf32>
    %18 = vector.shape_cast %17 : vector<1x4x256xf32> to vector<4x256xf32>
    %19 = tpu.concatenate %18, %0 in 0 : vector<4x256xf32>, vector<1x256xf32> -> vector<5x256xf32>
    %c0_17 = arith.constant 0 : index
    %c0_18 = arith.constant 0 : index
    %20 = vector.load %arg1[%c0_17, %c0_18] : memref<32x5xf32, #tpu.memory_space<vmem>>, vector<32x5xf32>
    %cst_19 = arith.constant dense<0.000000e+00> : vector<32x256xf32>
    %21 = tpu.matmul %20, %19, %cst_19 {dimension_numbers = #tpu.dot_dimension_numbers<[1], [0], [0], [1], [0, 0, 1, 1], [], []>} : vector<32x5xf32>, vector<5x256xf32>, vector<32x256xf32> -> vector<32x256xf32>
    %cst_20 = arith.constant 0.000000e+00 : f32
    %22 = vector.broadcast %cst_20 : f32 to vector<32x256xf32>
    %23 = arith.maximumf %21, %22 : vector<32x256xf32>
    %c1_21 = arith.constant 1 : index
    %c0_22 = arith.constant 0 : index
    %c0_23 = arith.constant 0 : index
    %24 = vector.load %arg3[%c1_21, %c0_22, %c0_23] : memref<2x32x256xf32, #tpu.memory_space<vmem>>, vector<1x32x256xf32>
    %25 = vector.shape_cast %24 : vector<1x32x256xf32> to vector<32x256xf32>
    %26 = vector.shape_cast %23 : vector<32x256xf32> to vector<1x32x256xf32>
    tpu.vector_store %arg3[%c1_21, %c0_22, %c0_23], %26 {strides = array<i32>} : memref<2x32x256xf32, #tpu.memory_space<vmem>>, vector<1x32x256xf32>,
    %27 = tpu.concatenate %23, %0 in 0 : vector<32x256xf32>, vector<1x256xf32> -> vector<33x256xf32>
    %c0_24 = arith.constant 0 : index
    %c0_25 = arith.constant 0 : index
    %28 = vector.load %arg2[%c0_24, %c0_25] : memref<8x33xf32, #tpu.memory_space<vmem>>, vector<8x33xf32>
    %cst_26 = arith.constant dense<0.000000e+00> : vector<8x256xf32>
    %29 = tpu.matmul %28, %27, %cst_26 {dimension_numbers = #tpu.dot_dimension_numbers<[1], [0], [0], [1], [0, 0, 1, 1], [], []>} : vector<8x33xf32>, vector<33x256xf32>, vector<8x256xf32> -> vector<8x256xf32>
    %c1_27 = arith.constant 1 : index
    %c0_28 = arith.constant 0 : index
    %c0_29 = arith.constant 0 : index
    %30 = vector.load %arg4[%c1_27, %c0_28, %c0_29] : memref<2x8x256xf32, #tpu.memory_space<vmem>>, vector<1x8x256xf32>
    %31 = vector.shape_cast %30 : vector<1x8x256xf32> to vector<8x256xf32>
    %32 = vector.shape_cast %29 : vector<8x256xf32> to vector<1x8x256xf32>
    tpu.vector_store %arg4[%c1_27, %c0_28, %c0_29], %32 {strides = array<i32>} : memref<2x8x256xf32, #tpu.memory_space<vmem>>, vector<1x8x256xf32>,
    return
  }
}

</mosaic_0001>

<bundles_post_ra>
// kernel: tpu_custom_call.1
= control target key start
LH: loop header
LB: loop body
LE: loop exit
PB: predicated region body
PF: predicated region fallthrough
CT: control target
= control target key end

     0   :  { %10 = vsyncpa [#allocation3], 0  ;;  %s544_s0 = inlined_call_operand.vmem [shape: f32[2,4,256], index: 0, kind: input, shape index: {}]   ;;  %s545_s1 = inlined_call_operand.vmem [shape: f32[32,5], index: 1, kind: input, shape index: {}]   ;;  %s546_s2 = inlined_call_operand.vmem [shape: f32[8,33], index: 2, kind: input, shape index: {}]   ;;  %s547_s3 = inlined_call_operand.hbm [shape: f32[2,32,256], index: 3, kind: output, shape index: {0}]   ;;  %s548_s4 = inlined_call_operand.hbm [shape: f32[2,8,256], index: 4, kind: output, shape index: {1}]  }
   0x1   :  { %v18_v0 = vld [vmem:[%s544_s0] sm:$0xff] }
   0x2   :  { %20 = vst [vmem:[#allocation1] ss:$2 sm:$0xff] %v18_v0 }
   0x3   :  { %11 = vsyncpa [#allocation5], 0  ;;  %vm25_vm0 = vcmask 1043456   ;;  %v381_v1 = vld [vmem:[%s544_s0 + $0x8] sm:$0xff]  ;;  %vm45_vm1 = vcmask 1044480   ;;  %v492_v2 = vld [vmem:[%s545_s1] sm:$0xff] }
   0x4   :  { %vm32_vm2 = vcmask 39936   ;;  %v29_v7 = vld [vmem:[%s545_s1 + $0x8] sm:$0xff]  ;;  %v30_v8 = vld [vmem:[%s545_s1 + $0x10] sm:$0xff]  ;;  %v31_v9 = vld [vmem:[%s545_s1 + $0x18] sm:$0xff]  ;;  %vm131_vm3 = vcmask 1040384   ;;  %v453_v10 = vmov 1.0  }
   0x5   :  { %377 = vmatpush.msk.msra.mxu2 %vm131_vm3, %v453_v10  ;;  %379 = vmatpush.msk.msra.mxu3 %vm131_vm3, %v453_v10  ;;  %v126_v29 = vld [vmem:[%s546_s2] sm:$0xff]  ;;  %vm127_vm4 = vcmask 269312   ;;  %s454_s2 = smov [#allocation2]   ;;  %s337_s30 = sshll.u32 %s547_s3, 4  ;;  %s338_s30 = int_to_ptr.hbm [resolvable:$true] %s337_s30 }
   0x6   :  { %s335_s27 = sshll.u32 %s454_s2, 4  ;;  %s455_s5 = smov 256   ;;  %s336_s27 = int_to_ptr.vmem [resolvable:$true] %s335_s27 }
   0x7   :  { %s456_s6 = smov 16   ;;  %s457_s7 = smov [#allocation4]  }
   0x8   :  { %s348_s8 = sshll.u32 %s457_s7, 4  ;;  %s350_s11 = sshll.u32 %s548_s4, 4  ;;  %s349_s8 = int_to_ptr.vmem [resolvable:$true] %s348_s8  ;;  %s351_s11 = int_to_ptr.hbm [resolvable:$true] %s350_s11 }
   0x9   :  { %v21_v3 = vld.sshfl [vmem:[#allocation1] sm:$0xff pattern:$0x75316420]  ;;  %v22_v4 = vld.sshfl [vmem:[#allocation1 + $0x8] sm:$0xff pattern:$0x75316420] }
   0xa   :  { %v26_v5 = vsel %vm25_vm0, %v21_v3, 1.0  ;;  %v27_v6 = vsel %vm25_vm0, %v22_v4, 1.0  ;;  %180 = vst [vmem:[#allocation1] ss:$2 sm:$0xff] %v381_v1 }
   0xb   :  { %367 = vmatpush.msk.msra.mxu0 %vm45_vm1, %v26_v5  ;;  %372 = vmatpush.msk.msra.mxu1 %vm45_vm1, %v27_v6 }
   0xc   :  { %368 = vmatmul.msk.f32.vlgmr.msra.gmra.mxu0 %vm32_vm2, %v492_v2  ;;  %373 = vmatmul.msk.f32.vlgmr.msra.gmra.mxu1 %vm32_vm2, %v492_v2 }
   0xd   :  { %392 = vmatpush.msk.msrb.mxu0 %vm131_vm3, %v453_v10  ;;  %394 = vmatpush.msk.msrb.mxu1 %vm131_vm3, %v453_v10 }
  0x11   :  { %v181_v27 = vld.sshfl [vmem:[#allocation1] sm:$0xff pattern:$0x75316420]  ;;  %v182_v28 = vld.sshfl [vmem:[#allocation1 + $0x8] sm:$0xff pattern:$0x75316420] }
  0x12   :  { %v185_v30 = vsel %vm25_vm0, %v181_v27, 1.0  ;;  %v186_v31 = vsel %vm25_vm0, %v182_v28, 1.0 }
  0x14   :  { %369 = vmatmul.msk.f32.gmra.mxu0 %vm32_vm2, %v29_v7  ;;  %374 = vmatmul.msk.f32.gmra.mxu1 %vm32_vm2, %v29_v7 }
  0x1c   :  { %370 = vmatmul.msk.f32.gmra.mxu0 %vm32_vm2, %v30_v8  ;;  %375 = vmatmul.msk.f32.gmra.mxu1 %vm32_vm2, %v30_v8 }
  0x24   :  { %371 = vmatmul.msk.f32.gmra.mxu0 %vm32_vm2, %v31_v9  ;;  %376 = vmatmul.msk.f32.gmra.mxu1 %vm32_vm2, %v31_v9 }
  0x89   :  { %v69_v11 = vpop.f32.mrf.mxu0  ;;  %v98_v12 = vpop.f32.mrf.mxu1 }
  0x8a   :  { %v110_v13 = vmax.f32 %v69_v11, 0.0  ;;  %v111_v14 = vmax.f32 %v98_v12, 0.0 }
  0x8c   :  { %118 = vst [vmem:[#allocation2] sm:$0xff] %v110_v13 }
  0x8d   :  { %119 = vst [vmem:[#allocation2 + $0x8] sm:$0xff] %v111_v14 }
  0x91   :  { %v72_v15 = vpop.f32.mrf.mxu0  ;;  %v101_v16 = vpop.f32.mrf.mxu1 }
  0x92   :  { %v112_v17 = vmax.f32 %v72_v15, 0.0  ;;  %v113_v18 = vmax.f32 %v101_v16, 0.0 }
  0x94   :  { %120 = vst [vmem:[#allocation2 + $0x10] sm:$0xff] %v112_v17 }
  0x95   :  { %121 = vst [vmem:[#allocation2 + $0x18] sm:$0xff] %v113_v18 }
  0x99   :  { %v75_v19 = vpop.f32.mrf.mxu0  ;;  %v104_v20 = vpop.f32.mrf.mxu1 }
  0x9a   :  { %v114_v21 = vmax.f32 %v75_v19, 0.0  ;;  %v115_v22 = vmax.f32 %v104_v20, 0.0 }
  0x9c   :  { %122 = vst [vmem:[#allocation2 + $0x20] sm:$0xff] %v114_v21 }
  0x9d   :  { %123 = vst [vmem:[#allocation2 + $0x28] sm:$0xff] %v115_v22 }
  0xa1   :  { %v78_v23 = vpop.f32.mrf.mxu0  ;;  %v107_v24 = vpop.f32.mrf.mxu1 }
  0xa2   :  { %v116_v25 = vmax.f32 %v78_v23, 0.0  ;;  %v117_v26 = vmax.f32 %v107_v24, 0.0 }
  0xa4   :  { %124 = vst [vmem:[#allocation2 + $0x30] sm:$0xff] %v116_v25  ;;  %147 = vmatpush.msra.mxu2 %v116_v25  ;;  %167 = vmatpush.msra.mxu3 %v117_v26 }
  0xa5   :  { %125 = vst [vmem:[#allocation2 + $0x38] sm:$0xff] %v117_v26 }
  0xa6   :  { %148 = vmatpush.msra.mxu2 %v114_v21  ;;  %168 = vmatpush.msra.mxu3 %v115_v22 }
  0xa8   :  { %149 = vmatpush.msra.mxu2 %v112_v17  ;;  %169 = vmatpush.msra.mxu3 %v113_v18 }
  0xaa   :  { %150 = vmatpush.msra.mxu2 %v110_v13  ;;  %170 = vmatpush.msra.mxu3 %v111_v14 }
  0xab   :  { %378 = vmatmul.msk.f32.vlgmr.msra.gmra.mxu2 %vm127_vm4, %v126_v29  ;;  %380 = vmatmul.msk.f32.vlgmr.msra.gmra.mxu3 %vm127_vm4, %v126_v29 }
  0xac   :  { %382 = vmatpush.msk.msrb.mxu2 %vm45_vm1, %v185_v30  ;;  %387 = vmatpush.msk.msrb.mxu3 %vm45_vm1, %v186_v31 }
  0xb3   :  { %383 = vmatmul.msk.f32.vlgmr.msrb.gmra.mxu2 %vm32_vm2, %v492_v2  ;;  %388 = vmatmul.msk.f32.vlgmr.msrb.gmra.mxu3 %vm32_vm2, %v492_v2 }
  0xbb   :  { %384 = vmatmul.msk.f32.gmra.mxu2 %vm32_vm2, %v29_v7  ;;  %389 = vmatmul.msk.f32.gmra.mxu3 %vm32_vm2, %v29_v7 }
  0xc3   :  { %385 = vmatmul.msk.f32.gmra.mxu2 %vm32_vm2, %v30_v8  ;;  %390 = vmatmul.msk.f32.gmra.mxu3 %vm32_vm2, %v30_v8 }
  0xcb   :  { %386 = vmatmul.msk.f32.gmra.mxu2 %vm32_vm2, %v31_v9  ;;  %391 = vmatmul.msk.f32.gmra.mxu3 %vm32_vm2, %v31_v9 }
 0x12e   :  { %v152_v32 = vpop.f32.mrf.mxu2  ;;  %v172_v33 = vpop.f32.mrf.mxu3 }
 0x12f   :  { %175 = vst [vmem:[#allocation4] sm:$0xff] %v152_v32 }
 0x130   :  { %176 = vst [vmem:[#allocation4 + $0x8] sm:$0xff] %v172_v33 }
 0x136   :  { %v226_v34 = vpop.f32.mrf.mxu2  ;;  %v255_v35 = vpop.f32.mrf.mxu3 }
 0x137   :  { %v267_v36 = vmax.f32 %v226_v34, 0.0  ;;  %v268_v37 = vmax.f32 %v255_v35, 0.0 }
 0x139   :  { %276 = vst [vmem:[#allocation2 + $0x40] sm:$0xff] %v267_v36 }
 0x13a   :  { %277 = vst [vmem:[#allocation2 + $0x48] sm:$0xff] %v268_v37 }
 0x13e   :  { %v229_v38 = vpop.f32.mrf.mxu2  ;;  %v258_v39 = vpop.f32.mrf.mxu3 }
 0x13f   :  { %v269_v40 = vmax.f32 %v229_v38, 0.0  ;;  %v270_v41 = vmax.f32 %v258_v39, 0.0 }
 0x141   :  { %278 = vst [vmem:[#allocation2 + $0x50] sm:$0xff] %v269_v40 }
 0x142   :  { %279 = vst [vmem:[#allocation2 + $0x58] sm:$0xff] %v270_v41 }
 0x146   :  { %v232_v42 = vpop.f32.mrf.mxu2  ;;  %v261_v43 = vpop.f32.mrf.mxu3 }
 0x147   :  { %v271_v44 = vmax.f32 %v232_v42, 0.0  ;;  %v272_v45 = vmax.f32 %v261_v43, 0.0 }
 0x149   :  { %280 = vst [vmem:[#allocation2 + $0x60] sm:$0xff] %v271_v44 }
 0x14a   :  { %281 = vst [vmem:[#allocation2 + $0x68] sm:$0xff] %v272_v45 }
 0x14e   :  { %v235_v46 = vpop.f32.mrf.mxu2  ;;  %v264_v47 = vpop.f32.mrf.mxu3 }
 0x14f   :  { %v273_v48 = vmax.f32 %v235_v46, 0.0  ;;  %v274_v49 = vmax.f32 %v264_v47, 0.0 }
 0x151   :  { %282 = vst [vmem:[#allocation2 + $0x70] sm:$0xff] %v273_v48  ;;  %300 = vmatpush.msrb.mxu0 %v273_v48  ;;  %320 = vmatpush.msrb.mxu1 %v274_v49 }
 0x152   :  { %283 = vst [vmem:[#allocation2 + $0x78] sm:$0xff] %v274_v49 }
 0x153   :  { %301 = vmatpush.msrb.mxu0 %v271_v44  ;;  %321 = vmatpush.msrb.mxu1 %v272_v45  ;;  %343 = dma.vmem_to_hbm [thread:$0]  %s336_s27, 2048, %s338_s30, [#allocation3], %s455_s5, %s455_s5, %s456_s6  }
 0x155   :  { %302 = vmatpush.msrb.mxu0 %v269_v40  ;;  %322 = vmatpush.msrb.mxu1 %v270_v41 }
 0x157   :  { %303 = vmatpush.msrb.mxu0 %v267_v36  ;;  %323 = vmatpush.msrb.mxu1 %v268_v37 }
 0x158   :  { %393 = vmatmul.msk.f32.vlgmr.msrb.gmra.mxu0 %vm127_vm4, %v126_v29  ;;  %395 = vmatmul.msk.f32.vlgmr.msrb.gmra.mxu1 %vm127_vm4, %v126_v29 }
 0x1d5   :  { %v305_v50 = vpop.f32.mrf.mxu0  ;;  %v325_v51 = vpop.f32.mrf.mxu1 }
 0x1d6   :  { %329 = vst [vmem:[#allocation4 + $0x10] sm:$0xff] %v305_v50 }
 0x1d7   :  { %330 = vst [vmem:[#allocation4 + $0x18] sm:$0xff] %v325_v51 }
 0x1d8   :  { %356 = dma.vmem_to_hbm [thread:$0]  %s349_s8, 512, %s351_s11, [#allocation5], %s455_s5, %s455_s5, %s456_s6  }
 0x1d9   :  { %449 = dma.done.wait [#allocation3], 2048  }
 0x1da   :  { %450 = vsyncadd [#allocation3], 4294965248 }
 0x1db   :  { %451 = dma.done.wait [#allocation5], 512  }
 0x1dc   :  { %452 = vsyncadd [#allocation5], 4294966784 }
 0x1dd   :  { %365 = vsyncpa [#allocation3], 1 }
 0x1de   :  { %366 = vsyncpa [#allocation5], 1 }

</bundles_post_ra>
